<compile_context>
chip_gen: v7x
topology: tpu7x:2x2x1
jax: 0.10.0
libtpu: 0.0.40
codegen_flags: <defaults>
</compile_context>

<pallas_src>
import jax
import jax.numpy as jnp
from jax.experimental import pallas as pl
from jax.experimental.pallas import tpu as pltpu


def _round_up(x, m):
    return -(-x // m) * m


# -----------------------------------------------------------------------------
# Kernels
# -----------------------------------------------------------------------------
def _span_cls_fused_kernel(x_ref, w_ref, b_ref, o_ref):
    # x_ref: (bB, T*H) activations
    # w_ref: (T*H, C_pad) weight with tile(W, T) * (1/T) folded in
    # b_ref: (1, C_pad) f32 bias     o_ref: (bB, C_pad) f32
    # The span mean is already folded into w_ref, so the whole head is a
    # single MXU contraction + bias add.
    logits = jnp.dot(x_ref[...], w_ref[...], preferred_element_type=jnp.float32)
    o_ref[...] = logits + b_ref[...]


def _span_cls_pool_kernel(x_ref, w_ref, b_ref, o_ref):
    # x_ref: (bB, T, H) activations
    # w_ref: (H, C_pad) weight with the 1/T mean scale folded in
    # Used when T*H is large enough that a T-replicated weight would dominate
    # VMEM / HBM traffic (mainly a v7x concern with its 64 MiB VMEM).
    pooled = jnp.sum(x_ref[...].astype(jnp.float32), axis=1)          # (bB, H)
    logits = jnp.dot(pooled.astype(w_ref.dtype), w_ref[...],
                     preferred_element_type=jnp.float32)
    o_ref[...] = logits + b_ref[...]


# -----------------------------------------------------------------------------
# One-time parameter preparation (hoisted out of the forward path)
# -----------------------------------------------------------------------------
def prepare_params(weight, bias, span_len, feature_dtype=jnp.float32,
                   use_bf16_matmul=False, replicate_weight_budget_bytes=8 << 20):
    """Build padded/fused weights once at init.

    weight: (H, C), bias: (C,), span_len: T.
    use_bf16_matmul: optionally downcast the contraction to bf16 for f32
    inputs (faster MXU path, slightly different rounding) — off by default to
    match the reference numerics.
    """
    H, C = weight.shape
    T = int(span_len)
    C_pad = _round_up(C, 128)

    feature_dtype = jnp.dtype(feature_dtype)
    if feature_dtype == jnp.dtype(jnp.bfloat16) or use_bf16_matmul:
        matmul_dtype = jnp.bfloat16
    else:
        matmul_dtype = jnp.float32
    w_itemsize = jnp.dtype(matmul_dtype).itemsize

    w_scaled = weight.astype(jnp.float32) * (1.0 / T)                 # fold mean scale
    b_pad = jnp.pad(bias.astype(jnp.float32), (0, C_pad - C)).reshape(1, C_pad)

    # Fused (T-replicated) weight only while its footprint stays small.
    if T * H * C_pad * w_itemsize <= replicate_weight_budget_bytes:
        mode = "fused"
        w_pad = jnp.pad(jnp.tile(w_scaled, (T, 1)),
                        ((0, 0), (0, C_pad - C))).astype(matmul_dtype)   # (T*H, C_pad)
    else:
        mode = "pooled"
        w_pad = jnp.pad(w_scaled, ((0, 0), (0, C_pad - C))).astype(matmul_dtype)  # (H, C_pad)

    return dict(mode=mode, w=w_pad, b=b_pad, span_len=T, hidden_dim=H,
                n_classes=C, c_pad=C_pad, matmul_dtype=jnp.dtype(matmul_dtype))


# -----------------------------------------------------------------------------
# Sizing helpers (generation-aware)
# -----------------------------------------------------------------------------
def _vmem_budget_bytes():
    """Working-set budget + vmem_limit cap derived from the chip's VMEM."""
    try:
        cap = int(pltpu.get_tpu_info().vmem_capacity_bytes)
    except Exception:
        cap = 64 << 20                                    # conservative (v7x per-TC)
    budget = min(cap // 2, 40 << 20)                      # v5e/v6e: 40 MiB, v7x: 32 MiB
    limit_cap = min(48 << 20, (cap * 5) // 8)             # v5e/v6e: 48 MiB, v7x: 40 MiB
    return budget, limit_cap


def _choose_block_b(B, per_row_bytes, fixed_bytes, align, budget_bytes):
    """Largest batch tile fitting the budget, aligned, with >=2 grid steps
    whenever B is large enough (so v7x's two TensorCores both get work)."""
    avail = max(budget_bytes - fixed_bytes, per_row_bytes * align)
    bB = max(align, min(avail // per_row_bytes, 2048))
    bB = (bB // align) * align
    if B >= 2 * align:
        bB = min(bB, _round_up(-(-B // 2), align))        # keep >=2 grid steps
    if bB >= B:
        return B                                          # block == full dim is legal
    return int(bB)


# -----------------------------------------------------------------------------
# Forward
# -----------------------------------------------------------------------------
def wifi_ar_span_cls_forward(features, params, *, trim=True):
    """features: (B, T, H); params from prepare_params().
    Returns {'label': (B, C) f32} (or (B, C_pad) with trim=False to skip the
    per-call slice copy when the consumer can handle padded logits)."""
    B, T, H = features.shape
    assert T == params['span_len'] and H == params['hidden_dim']
    C, C_pad = params['n_classes'], params['c_pad']
    mode = params['mode']
    w, b = params['w'], params['b']
    matmul_dtype = params['matmul_dtype']

    x = features
    if matmul_dtype == jnp.dtype(jnp.bfloat16) and x.dtype != jnp.bfloat16:
        x = x.astype(jnp.bfloat16)

    x_itemsize = jnp.dtype(x.dtype).itemsize
    w_itemsize = jnp.dtype(matmul_dtype).itemsize
    align = 16 if x_itemsize == 2 else 8                  # packed-sublane alignment
    budget, limit_cap = _vmem_budget_bytes()
    K = T * H

    if mode == "fused":
        x_op = x.reshape(B, K)
        kernel = _span_cls_fused_kernel
        w_elems = K * C_pad
        per_row = 2 * K * x_itemsize + 2 * C_pad * 4      # double-buffered in + out
        flops = 2 * B * K * C_pad

        def x_spec(bB):
            return pl.BlockSpec((bB, K), lambda i: (i, 0))
        w_shape = (K, C_pad)
    else:
        x_op = x
        kernel = _span_cls_pool_kernel
        w_elems = H * C_pad
        per_row = 2 * K * x_itemsize + 2 * C_pad * 4
        flops = B * K + 2 * B * H * C_pad

        def x_spec(bB):
            return pl.BlockSpec((bB, T, H), lambda i: (i, 0, 0))
        w_shape = (H, C_pad)

    bytes_accessed = (B * K * x_itemsize + w_elems * w_itemsize
                      + C_pad * 4 + B * C_pad * 4)
    cost = pl.CostEstimate(flops=int(flops), transcendentals=0,
                           bytes_accessed=int(bytes_accessed))

    def run(single_buffer_resident):
        w_bufs = 1 if single_buffer_resident else 2
        fixed = w_bufs * (w_elems * w_itemsize + C_pad * 4)
        bB = _choose_block_b(B, per_row, fixed, align, budget)
        grid = (pl.cdiv(B, bB),)
        vmem_needed = bB * per_row + fixed
        vmem_limit = int(min(max(vmem_needed * 3 // 2, 8 << 20), limit_cap))
        resident_kw = ({"pipeline_mode": pl.Buffered(1)}
                       if single_buffer_resident else {})
        return pl.pallas_call(
            kernel,
            out_shape=jax.ShapeDtypeStruct((B, C_pad), jnp.float32),
            grid=grid,
            in_specs=[
                x_spec(bB),                                              # batch-tiled
                pl.BlockSpec(w_shape, lambda i: (0, 0), **resident_kw),  # resident weight
                pl.BlockSpec((1, C_pad), lambda i: (0, 0), **resident_kw),  # resident bias
            ],
            out_specs=pl.BlockSpec((bB, C_pad), lambda i: (i, 0)),
            compiler_params=pltpu.CompilerParams(
                dimension_semantics=("parallel",),   # v7x: both TCs split the batch
                vmem_limit_bytes=vmem_limit,
            ),
            cost_estimate=cost,
        )(x_op, w, b)

    try:
        logits_pad = run(True)                    # single-buffer resident operands
        jax.block_until_ready(logits_pad)
    except Exception:
        logits_pad = run(False)                   # fallback: default double buffering

    label = logits_pad[:, :C] if trim else logits_pad
    return {'label': label}


# -----------------------------------------------------------------------------
# Deterministic init mimicking nn.Linear default: U(-1/sqrt(H), 1/sqrt(H))
# -----------------------------------------------------------------------------
def init_linear(hidden_dim, n_classes, key):
    kw, kb = jax.random.split(key)
    bound = 1.0 / jnp.sqrt(jnp.float32(hidden_dim))
    weight = jax.random.uniform(kw, (hidden_dim, n_classes),
                                minval=-bound, maxval=bound, dtype=jnp.float32)
    bias = jax.random.uniform(kb, (n_classes,),
                              minval=-bound, maxval=bound, dtype=jnp.float32)
    return weight, bias


if __name__ == "__main__":
    # Shapes consistent with the module: batch=2, span length=8, hidden=32,
    # label_n_classes=7 (WiFiARSpanCLSConfig).
    B, T, H = 2, 8, 32
    N_CLASSES = 7

    key = jax.random.PRNGKey(0)
    kx, kparam = jax.random.split(key)
    features = jax.random.normal(kx, (B, T, H), dtype=jnp.float32)
    weight, bias = init_linear(H, N_CLASSES, kparam)

    # One-time weight prep (tile / scale / pad) — hoisted out of the forward.
    params = prepare_params(weight, bias, span_len=T, feature_dtype=features.dtype)

    out = wifi_ar_span_cls_forward(features, params)
    jax.block_until_ready(out['label'])

    # Reference in plain JAX (original module math).
    ref = jnp.mean(features, axis=1) @ weight + bias
    assert out['label'].shape == (B, N_CLASSES)
    assert jnp.allclose(out['label'], ref, atol=1e-4, rtol=1e-4)

    print("KERNEL_OK")
</pallas_src>

<mosaic_0001>
module attributes {stable_mosaic.version = 11 : i64} {
  func.func @_span_cls_fused_kernel(%arg0: i32, %arg1: memref<2x256xf32, #tpu.memory_space<vmem>>, %arg2: memref<256x128xf32, #tpu.memory_space<vmem>>, %arg3: memref<1x128xf32, #tpu.memory_space<vmem>>, %arg4: memref<2x128xf32, #tpu.memory_space<vmem>>) attributes {dimension_semantics = [#tpu.dimension_semantics<parallel>], iteration_bounds = array<i64: 1>, scalar_prefetch = 0 : i64, scratch_operands = 0 : i64, tpu.core_type = #tpu.core_type<tc>, window_params = [{transform_indices = @transform_0, window_bounds = array<i64: 2, 256>}, {pipeline_mode = #tpu.pipeline_mode<synchronous>, transform_indices = @transform_1, window_bounds = array<i64: 256, 128>}, {pipeline_mode = #tpu.pipeline_mode<synchronous>, transform_indices = @transform_2, window_bounds = array<i64: 1, 128>}, {transform_indices = @transform_3, window_bounds = array<i64: 2, 128>}]} {
    %c0 = arith.constant 0 : index
    %c0_0 = arith.constant 0 : index
    %0 = vector.load %arg1[%c0, %c0_0] : memref<2x256xf32, #tpu.memory_space<vmem>>, vector<2x256xf32>
    %c0_1 = arith.constant 0 : index
    %c0_2 = arith.constant 0 : index
    %1 = vector.load %arg2[%c0_1, %c0_2] : memref<256x128xf32, #tpu.memory_space<vmem>>, vector<256x128xf32>
    %cst = arith.constant dense<0.000000e+00> : vector<2x128xf32>
    %2 = tpu.matmul %0, %1, %cst {dimension_numbers = #tpu.dot_dimension_numbers<[1], [0], [0], [1], [0, 0, 1, 1], [], []>} : vector<2x256xf32>, vector<256x128xf32>, vector<2x128xf32> -> vector<2x128xf32>
    %c0_3 = arith.constant 0 : index
    %c0_4 = arith.constant 0 : index
    %3 = vector.load %arg3[%c0_3, %c0_4] : memref<1x128xf32, #tpu.memory_space<vmem>>, vector<1x128xf32>
    %4 = vector.broadcast %3 : vector<1x128xf32> to vector<2x128xf32>
    %5 = arith.addf %2, %4 : vector<2x128xf32>
    %c0_5 = arith.constant 0 : index
    %c0_6 = arith.constant 0 : index
    %6 = vector.load %arg4[%c0_5, %c0_6] : memref<2x128xf32, #tpu.memory_space<vmem>>, vector<2x128xf32>
    tpu.vector_store %arg4[%c0_5, %c0_6], %5 {strides = array<i32>} : memref<2x128xf32, #tpu.memory_space<vmem>>, vector<2x128xf32>,
    return
  }
  func.func @transform_0(%arg0: i32) -> (i32, i32) {
    %c0_i32 = arith.constant 0 : i32
    %c0_i32_0 = arith.constant 0 : i32
    return %arg0, %c0_i32 : i32, i32
  }
  func.func @transform_1(%arg0: i32) -> (i32, i32) {
    %c0_i32 = arith.constant 0 : i32
    %c0_i32_0 = arith.constant 0 : i32
    %c0_i32_1 = arith.constant 0 : i32
    return %c0_i32, %c0_i32_0 : i32, i32
  }
  func.func @transform_2(%arg0: i32) -> (i32, i32) {
    %c0_i32 = arith.constant 0 : i32
    %c0_i32_0 = arith.constant 0 : i32
    %c0_i32_1 = arith.constant 0 : i32
    return %c0_i32, %c0_i32_0 : i32, i32
  }
  func.func @transform_3(%arg0: i32) -> (i32, i32) {
    %c0_i32 = arith.constant 0 : i32
    %c0_i32_0 = arith.constant 0 : i32
    return %arg0, %c0_i32 : i32, i32
  }
}

module attributes {stable_mosaic.version = 11 : i64} {
  func.func @_span_cls_fused_kernel(%arg0: i32, %arg1: memref<2x256xf32, #tpu.memory_space<vmem>>, %arg2: memref<256x128xf32, #tpu.memory_space<vmem>>, %arg3: memref<1x128xf32, #tpu.memory_space<vmem>>, %arg4: memref<2x128xf32, #tpu.memory_space<vmem>>) attributes {dimension_semantics = [#tpu.dimension_semantics<parallel>], iteration_bounds = array<i64: 1>, scalar_prefetch = 0 : i64, scratch_operands = 0 : i64, tpu.core_type = #tpu.core_type<tc>, window_params = [{transform_indices = @transform_0, window_bounds = array<i64: 2, 256>}, {pipeline_mode = #tpu.pipeline_mode<synchronous>, transform_indices = @transform_1, window_bounds = array<i64: 256, 128>}, {pipeline_mode = #tpu.pipeline_mode<synchronous>, transform_indices = @transform_2, window_bounds = array<i64: 1, 128>}, {transform_indices = @transform_3, window_bounds = array<i64: 2, 128>}]} {
    %c0 = arith.constant 0 : index
    %c0_0 = arith.constant 0 : index
    %0 = vector.load %arg1[%c0, %c0_0] : memref<2x256xf32, #tpu.memory_space<vmem>>, vector<2x256xf32>
    %c0_1 = arith.constant 0 : index
    %c0_2 = arith.constant 0 : index
    %1 = vector.load %arg2[%c0_1, %c0_2] : memref<256x128xf32, #tpu.memory_space<vmem>>, vector<256x128xf32>
    %cst = arith.constant dense<0.000000e+00> : vector<2x128xf32>
    %2 = tpu.matmul %0, %1, %cst {dimension_numbers = #tpu.dot_dimension_numbers<[1], [0], [0], [1], [0, 0, 1, 1], [], []>} : vector<2x256xf32>, vector<256x128xf32>, vector<2x128xf32> -> vector<2x128xf32>
    %c0_3 = arith.constant 0 : index
    %c0_4 = arith.constant 0 : index
    %3 = vector.load %arg3[%c0_3, %c0_4] : memref<1x128xf32, #tpu.memory_space<vmem>>, vector<1x128xf32>
    %4 = vector.broadcast %3 : vector<1x128xf32> to vector<2x128xf32>
    %5 = arith.addf %2, %4 : vector<2x128xf32>
    %c0_5 = arith.constant 0 : index
    %c0_6 = arith.constant 0 : index
    %6 = vector.load %arg4[%c0_5, %c0_6] : memref<2x128xf32, #tpu.memory_space<vmem>>, vector<2x128xf32>
    tpu.vector_store %arg4[%c0_5, %c0_6], %5 {strides = array<i32>} : memref<2x128xf32, #tpu.memory_space<vmem>>, vector<2x128xf32>,
    return
  }
  func.func @transform_0(%arg0: i32) -> (i32, i32) {
    %c0_i32 = arith.constant 0 : i32
    %c0_i32_0 = arith.constant 0 : i32
    return %arg0, %c0_i32 : i32, i32
  }
  func.func @transform_1(%arg0: i32) -> (i32, i32) {
    %c0_i32 = arith.constant 0 : i32
    %c0_i32_0 = arith.constant 0 : i32
    %c0_i32_1 = arith.constant 0 : i32
    return %c0_i32, %c0_i32_0 : i32, i32
  }
  func.func @transform_2(%arg0: i32) -> (i32, i32) {
    %c0_i32 = arith.constant 0 : i32
    %c0_i32_0 = arith.constant 0 : i32
    %c0_i32_1 = arith.constant 0 : i32
    return %c0_i32, %c0_i32_0 : i32, i32
  }
  func.func @transform_3(%arg0: i32) -> (i32, i32) {
    %c0_i32 = arith.constant 0 : i32
    %c0_i32_0 = arith.constant 0 : i32
    return %arg0, %c0_i32 : i32, i32
  }
}

</mosaic_0001>

<bundles_post_ra>
// kernel: tpu_custom_call.1
= control target key start
LH: loop header
LB: loop body
LE: loop exit
PB: predicated region body
PF: predicated region fallthrough
CT: control target
= control target key end

     0   :  { %8 = vsyncpa [#allocation3], 0  ;;  %s396_s0 = inlined_call_operand.hbm [shape: f32[2,256], index: 0, kind: input, shape index: {}]   ;;  %s397_s1 = inlined_call_operand.hbm [shape: f32[256,128], index: 1, kind: input, shape index: {}]   ;;  %s398_s2 = inlined_call_operand.vmem [shape: f32[1,128], index: 2, kind: input, shape index: {}]   ;;  %s399_s3 = inlined_call_operand.hbm [shape: f32[2,128], index: 3, kind: output, shape index: {}]  }
   0x1   :  { %9 = vsyncpa [#allocation6], 0 }
   0x2   :  { %10 = vsyncpa [#allocation4], 0  ;;  %s325_s12 = smov [#allocation2]   ;;  %s326_s14 = smov [#allocation5]  }
   0x3   :  { %s17_s13 = sshll.u32 %s325_s12, 4  ;;  %s26_s15 = sshll.u32 %s326_s14, 4  ;;  %s18_s13 = int_to_ptr.vmem [resolvable:$true] %s17_s13  ;;  %s350_s15 = int_to_ptr.vmem [resolvable:$true] %s26_s15 }
   0x4   :  { %s253_s18 = scalar_lea.hbm %s396_s0, 64 }
   0x5   :  { %p254_p0 = scmp.ne.s32.totalorder %s396_s0, %s253_s18  ;;  %p257_p1 = scmp.lt.u32.totalorder %s253_s18, %s396_s0 }
   0x7   :  { %p259_p2 = pnand %p257_p1, %p254_p0 }
   0x9   :  { %262 = shalt.err (!%p259_p2)
}
   0xa   :  { %s263_s23 = scalar_lea.vmem %s18_s13, 64  ;;  %p268_p4 = scmp.lt.s32.totalorder %s18_s13, %s18_s13 }
   0xb   :  { %p264_p3 = scmp.ne.s32.totalorder %s18_s13, %s263_s23  ;;  %p269_p5 = scmp.lt.s32.totalorder %s263_s23, %s263_s23 }
   0xd   :  { %p270_p6 = por %p269_p5, %p268_p4 }
   0xf   :  { %p271_p7 = pnand %p270_p6, %p264_p3 }
  0x11   :  { %274 = shalt.err (!%p271_p7)
}
  0x12   :  { %20 = dma.hbm_to_vmem [thread:$0]  %s396_s0, 64, %s18_s13, [#allocation3]  }
  0x13   :  { %s275_s28 = scalar_lea.hbm %s397_s1, 4096 }
  0x14   :  { %p276_p8 = scmp.ne.s32.totalorder %s397_s1, %s275_s28  ;;  %p279_p9 = scmp.lt.u32.totalorder %s275_s28, %s397_s1 }
  0x16   :  { %p281_p10 = pnand %p279_p9, %p276_p8 }
  0x18   :  { %284 = shalt.err (!%p281_p10)
}
  0x19   :  { %s285_s6 = scalar_lea.vmem %s350_s15, 4096  ;;  %p290_p12 = scmp.lt.s32.totalorder %s350_s15, %s350_s15 }
  0x1a   :  { %p286_p11 = scmp.ne.s32.totalorder %s350_s15, %s285_s6  ;;  %p291_p13 = scmp.lt.s32.totalorder %s285_s6, %s285_s6 }
  0x1c   :  { %p292_p0 = por %p291_p13, %p290_p12 }
  0x1e   :  { %p293_p1 = pnand %p292_p0, %p286_p11 }
  0x20   :  { %296 = shalt.err (!%p293_p1)
}
  0x21   :  { %s327_s0 = smov 128   ;;  %s328_s7 = smov 8  }
  0x22   :  { %32 = dma.hbm_to_vmem [thread:$0]  %s397_s1, 4096, %s350_s15, [#allocation6], %s327_s0, %s327_s0, %s328_s7  }
  0x23   :  { %319 = dma.done.wait [#allocation3], 64  }
  0x24   :  { %320 = vsyncadd [#allocation3], 4294967232 }
  0x25   :  { %321 = dma.done.wait [#allocation6], 4096  }
  0x26   :  { %322 = vsyncadd [#allocation6], 4294963200  ;;  %v58_v0 = vld [vmem:[#allocation5 + $0x80] sm:$0xff]  ;;  %v59_v1 = vld [vmem:[#allocation5 + $0x88] sm:$0xff]  ;;  %s329_s11 = smov [#allocation7]  }
  0x27   :  { %v42_v2 = vld [vmem:[#allocation5] sm:$0xff]  ;;  %v216_v3 = vpack.c.bf16 %v59_v1, %v58_v0  ;;  %v43_v4 = vld [vmem:[#allocation5 + $0x8] sm:$0xff]  ;;  %v60_v5 = vld [vmem:[#allocation5 + $0x90] sm:$0xff]  ;;  %s169_s12 = sshll.u32 %s329_s11, 4  ;;  %s170_s12 = int_to_ptr.vmem [resolvable:$true] %s169_s12 }
  0x28   :  { %v61_v6 = vld [vmem:[#allocation5 + $0x98] sm:$0xff]  ;;  %v218_v7 = vpack.c.bf16 %v43_v4, %v42_v2  ;;  %v44_v9 = vld [vmem:[#allocation5 + $0x10] sm:$0xff]  ;;  %v62_v11 = vld [vmem:[#allocation5 + $0xa0] sm:$0xff]  ;;  %s297_s13 = scalar_lea.vmem %s170_s12, 32  ;;  %p302_p3 = scmp.lt.s32.totalorder %s170_s12, %s170_s12 }
  0x29   :  { %v220_v8 = vpack.c.bf16 %v61_v6, %v60_v5  ;;  %v45_v10 = vld [vmem:[#allocation5 + $0x18] sm:$0xff]  ;;  %217 = vmatprep.subr.bf16.mxu0 %v216_v3  ;;  %v63_v12 = vld [vmem:[#allocation5 + $0xa8] sm:$0xff]  ;;  %v46_v15 = vld [vmem:[#allocation5 + $0x20] sm:$0xff]  ;;  %p298_p2 = scmp.ne.s32.totalorder %s170_s12, %s297_s13  ;;  %p303_p4 = scmp.lt.s32.totalorder %s297_s13, %s297_s13 }
  0x2a   :  { %219 = vmatpush3.bf16.msra.mxu0 %v218_v7  ;;  %v222_v13 = vpack.c.bf16 %v45_v10, %v44_v9  ;;  %v224_v14 = vpack.c.bf16 %v63_v12, %v62_v11  ;;  %v47_v16 = vld [vmem:[#allocation5 + $0x28] sm:$0xff]  ;;  %v64_v17 = vld [vmem:[#allocation5 + $0xb0] sm:$0xff]  ;;  %v65_v18 = vld [vmem:[#allocation5 + $0xb8] sm:$0xff] }
  0x2b   :  { %221 = vmatprep.subr.bf16.mxu0 %v220_v8  ;;  %v226_v19 = vpack.c.bf16 %v47_v16, %v46_v15  ;;  %v228_v20 = vpack.c.bf16 %v65_v18, %v64_v17  ;;  %v48_v21 = vld [vmem:[#allocation5 + $0x30] sm:$0xff]  ;;  %v49_v22 = vld [vmem:[#allocation5 + $0x38] sm:$0xff]  ;;  %v66_v23 = vld [vmem:[#allocation5 + $0xc0] sm:$0xff]  ;;  %p304_p5 = por %p303_p4, %p302_p3 }
  0x2c   :  { %v67_v24 = vld [vmem:[#allocation5 + $0xc8] sm:$0xff]  ;;  %v180_v25 = vld.sshfl [vmem:[#allocation2] sm:$0x33 pattern:$0x76325410]  ;;  %v230_v27 = vpack.c.bf16 %v49_v22, %v48_v21  ;;  %v50_v29 = vld [vmem:[#allocation5 + $0x40] sm:$0xff] }
  0x2d   :  { %v89_v26 = vcombine.high %v180_v25, %v180_v25  ;;  %v232_v28 = vpack.c.bf16 %v67_v24, %v66_v23  ;;  %v51_v30 = vld [vmem:[#allocation5 + $0x48] sm:$0xff]  ;;  %v68_v31 = vld [vmem:[#allocation5 + $0xd0] sm:$0xff]  ;;  %v69_v32 = vld [vmem:[#allocation5 + $0xd8] sm:$0xff]  ;;  %p305_p6 = pnand %p304_p5, %p298_p2 }
  0x2e   :  { %223 = vmatpush3.bf16.msra.mxu0 %v222_v13  ;;  %v234_v33 = vpack.c.bf16 %v51_v30, %v50_v29  ;;  %v236_v34 = vpack.c.bf16 %v69_v32, %v68_v31  ;;  %v52_v35 = vld [vmem:[#allocation5 + $0x50] sm:$0xff]  ;;  %v53_v36 = vld [vmem:[#allocation5 + $0x58] sm:$0xff]  ;;  %v70_v37 = vld [vmem:[#allocation5 + $0xe0] sm:$0xff] }
  0x2f   :  { %225 = vmatprep.subr.bf16.mxu0 %v224_v14  ;;  %156 = vmatprep.mubr.f32.mxu0 %v89_v26  ;;  %v71_v38 = vld [vmem:[#allocation5 + $0xe8] sm:$0xff]  ;;  %v238_v39 = vpack.c.bf16 %v53_v36, %v52_v35  ;;  %v54_v41 = vld [vmem:[#allocation5 + $0x60] sm:$0xff]  ;;  %v72_v43 = vld [vmem:[#allocation5 + $0xf0] sm:$0xff] }
  0x30   :  { %v240_v40 = vpack.c.bf16 %v71_v38, %v70_v37  ;;  %v55_v42 = vld [vmem:[#allocation5 + $0x68] sm:$0xff]  ;;  %v73_v44 = vld [vmem:[#allocation5 + $0xf8] sm:$0xff]  ;;  %v56_v47 = vld [vmem:[#allocation5 + $0x70] sm:$0xff] }
  0x31   :  { %v242_v45 = vpack.c.bf16 %v55_v42, %v54_v41  ;;  %v244_v46 = vpack.c.bf16 %v73_v44, %v72_v43  ;;  %v57_v48 = vld [vmem:[#allocation5 + $0x78] sm:$0xff] }
  0x32   :  { %227 = vmatpush3.bf16.msra.mxu0 %v226_v19  ;;  %v246_v49 = vpack.c.bf16 %v57_v48, %v56_v47  ;;  %v179_v51 = vld [vmem:[%s398_s2] ss:$0 sm:$0xff] }
  0x33   :  { %229 = vmatprep.subr.bf16.mxu0 %v228_v20 }
  0x36   :  { %231 = vmatpush3.bf16.msra.mxu0 %v230_v27 }
  0x37   :  { %233 = vmatprep.subr.bf16.mxu0 %v232_v28 }
  0x3a   :  { %235 = vmatpush3.bf16.msra.mxu0 %v234_v33 }
  0x3b   :  { %237 = vmatprep.subr.bf16.mxu0 %v236_v34 }
  0x3e   :  { %239 = vmatpush3.bf16.msra.mxu0 %v238_v39 }
  0x3f   :  { %241 = vmatprep.subr.bf16.mxu0 %v240_v40 }
  0x42   :  { %243 = vmatpush3.bf16.msra.mxu0 %v242_v45 }
  0x43   :  { %245 = vmatprep.subr.bf16.mxu0 %v244_v46 }
  0x46   :  { %247 = vmatpush3.bf16.msra.mxu0 %v246_v49 }
  0x49   :  { %157 = vmatmul.mubr.f32.vlgmr.msra.gmra.mrb[0].mxu0 %v180_v25 }
 0x11c   :  { %v213_v50 = vpop.f32.mrb[0].mxu0 }
 0x11d   :  { %v214_v52 = vpop.f32.mrb[1].mxu0 }
 0x11e   :  { %v215_v53 = vadd.f32 %v214_v52, %v213_v50 }
 0x120   :  { %v159_v54 = vadd.f32 %v215_v53, %v179_v51 }
 0x122   :  { %162 = vst [vmem:[#allocation7] sm:$0x3] %v159_v54 }
 0x123   :  { %308 = shalt.err (!%p305_p6)
}
 0x124   :  { %s309_s16 = scalar_lea.hbm %s399_s3, 32 }
 0x125   :  { %p310_p7 = scmp.ne.s32.totalorder %s399_s3, %s309_s16  ;;  %p313_p8 = scmp.lt.u32.totalorder %s309_s16, %s399_s3 }
 0x127   :  { %p315_p9 = pnand %p313_p8, %p310_p7 }
 0x129   :  { %318 = shalt.err (!%p315_p9)
}
 0x12a   :  { %172 = dma.vmem_to_hbm [thread:$0]  %s170_s12, 32, %s399_s3, [#allocation4]  }
 0x12b   :  { %323 = dma.done.wait [#allocation4], 32  }
 0x12c   :  { %324 = vsyncadd [#allocation4], 4294967264 }
 0x12d   :  { %176 = vsyncpa [#allocation3], 1 }
 0x12e   :  { %177 = vsyncpa [#allocation6], 1 }
 0x12f   :  { %178 = vsyncpa [#allocation4], 1 }

// kernel: tpu_custom_call.1
= control target key start
LH: loop header
LB: loop body
LE: loop exit
PB: predicated region body
PF: predicated region fallthrough
CT: control target
= control target key end

     0   :  { %8 = vsyncpa [#allocation3], 0  ;;  %s396_s0 = inlined_call_operand.hbm [shape: f32[2,256], index: 0, kind: input, shape index: {}]   ;;  %s397_s1 = inlined_call_operand.hbm [shape: f32[256,128], index: 1, kind: input, shape index: {}]   ;;  %s398_s2 = inlined_call_operand.vmem [shape: f32[1,128], index: 2, kind: input, shape index: {}]   ;;  %s399_s3 = inlined_call_operand.hbm [shape: f32[2,128], index: 3, kind: output, shape index: {}]  }
   0x1   :  { %9 = vsyncpa [#allocation6], 0 }
   0x2   :  { %10 = vsyncpa [#allocation4], 0  ;;  %s325_s12 = smov [#allocation2]   ;;  %s326_s14 = smov [#allocation5]  }
   0x3   :  { %s17_s13 = sshll.u32 %s325_s12, 4  ;;  %s26_s15 = sshll.u32 %s326_s14, 4  ;;  %s18_s13 = int_to_ptr.vmem [resolvable:$true] %s17_s13  ;;  %s350_s15 = int_to_ptr.vmem [resolvable:$true] %s26_s15 }
   0x4   :  { %s253_s18 = scalar_lea.hbm %s396_s0, 64 }
   0x5   :  { %p254_p0 = scmp.ne.s32.totalorder %s396_s0, %s253_s18  ;;  %p257_p1 = scmp.lt.u32.totalorder %s253_s18, %s396_s0 }
   0x7   :  { %p259_p2 = pnand %p257_p1, %p254_p0 }
   0x9   :  { %262 = shalt.err (!%p259_p2)
}
   0xa   :  { %s263_s23 = scalar_lea.vmem %s18_s13, 64  ;;  %p268_p4 = scmp.lt.s32.totalorder %s18_s13, %s18_s13 }
   0xb   :  { %p264_p3 = scmp.ne.s32.totalorder %s18_s13, %s263_s23  ;;  %p269_p5 = scmp.lt.s32.totalorder %s263_s23, %s263_s23 }
   0xd   :  { %p270_p6 = por %p269_p5, %p268_p4 }
   0xf   :  { %p271_p7 = pnand %p270_p6, %p264_p3 }
  0x11   :  { %274 = shalt.err (!%p271_p7)
}
  0x12   :  { %20 = dma.hbm_to_vmem [thread:$0]  %s396_s0, 64, %s18_s13, [#allocation3]  }
  0x13   :  { %s275_s28 = scalar_lea.hbm %s397_s1, 4096 }
  0x14   :  { %p276_p8 = scmp.ne.s32.totalorder %s397_s1, %s275_s28  ;;  %p279_p9 = scmp.lt.u32.totalorder %s275_s28, %s397_s1 }
  0x16   :  { %p281_p10 = pnand %p279_p9, %p276_p8 }
  0x18   :  { %284 = shalt.err (!%p281_p10)
}
  0x19   :  { %s285_s6 = scalar_lea.vmem %s350_s15, 4096  ;;  %p290_p12 = scmp.lt.s32.totalorder %s350_s15, %s350_s15 }
  0x1a   :  { %p286_p11 = scmp.ne.s32.totalorder %s350_s15, %s285_s6  ;;  %p291_p13 = scmp.lt.s32.totalorder %s285_s6, %s285_s6 }
  0x1c   :  { %p292_p0 = por %p291_p13, %p290_p12 }
  0x1e   :  { %p293_p1 = pnand %p292_p0, %p286_p11 }
  0x20   :  { %296 = shalt.err (!%p293_p1)
}
  0x21   :  { %s327_s0 = smov 128   ;;  %s328_s7 = smov 8  }
  0x22   :  { %32 = dma.hbm_to_vmem [thread:$0]  %s397_s1, 4096, %s350_s15, [#allocation6], %s327_s0, %s327_s0, %s328_s7  }
  0x23   :  { %319 = dma.done.wait [#allocation3], 64  }
  0x24   :  { %320 = vsyncadd [#allocation3], 4294967232 }
  0x25   :  { %321 = dma.done.wait [#allocation6], 4096  }
  0x26   :  { %322 = vsyncadd [#allocation6], 4294963200  ;;  %v58_v0 = vld [vmem:[#allocation5 + $0x80] sm:$0xff]  ;;  %v59_v1 = vld [vmem:[#allocation5 + $0x88] sm:$0xff]  ;;  %s329_s11 = smov [#allocation7]  }
  0x27   :  { %v42_v2 = vld [vmem:[#allocation5] sm:$0xff]  ;;  %v216_v3 = vpack.c.bf16 %v59_v1, %v58_v0  ;;  %v43_v4 = vld [vmem:[#allocation5 + $0x8] sm:$0xff]  ;;  %v60_v5 = vld [vmem:[#allocation5 + $0x90] sm:$0xff]  ;;  %s169_s12 = sshll.u32 %s329_s11, 4  ;;  %s170_s12 = int_to_ptr.vmem [resolvable:$true] %s169_s12 }
  0x28   :  { %v61_v6 = vld [vmem:[#allocation5 + $0x98] sm:$0xff]  ;;  %v218_v7 = vpack.c.bf16 %v43_v4, %v42_v2  ;;  %v44_v9 = vld [vmem:[#allocation5 + $0x10] sm:$0xff]  ;;  %v62_v11 = vld [vmem:[#allocation5 + $0xa0] sm:$0xff]  ;;  %s297_s13 = scalar_lea.vmem %s170_s12, 32  ;;  %p302_p3 = scmp.lt.s32.totalorder %s170_s12, %s170_s12 }
  0x29   :  { %v220_v8 = vpack.c.bf16 %v61_v6, %v60_v5  ;;  %v45_v10 = vld [vmem:[#allocation5 + $0x18] sm:$0xff]  ;;  %217 = vmatprep.subr.bf16.mxu0 %v216_v3  ;;  %v63_v12 = vld [vmem:[#allocation5 + $0xa8] sm:$0xff]  ;;  %v46_v15 = vld [vmem:[#allocation5 + $0x20] sm:$0xff]  ;;  %p298_p2 = scmp.ne.s32.totalorder %s170_s12, %s297_s13  ;;  %p303_p4 = scmp.lt.s32.totalorder %s297_s13, %s297_s13 }
  0x2a   :  { %219 = vmatpush3.bf16.msra.mxu0 %v218_v7  ;;  %v222_v13 = vpack.c.bf16 %v45_v10, %v44_v9  ;;  %v224_v14 = vpack.c.bf16 %v63_v12, %v62_v11  ;;  %v47_v16 = vld [vmem:[#allocation5 + $0x28] sm:$0xff]  ;;  %v64_v17 = vld [vmem:[#allocation5 + $0xb0] sm:$0xff]  ;;  %v65_v18 = vld [vmem:[#allocation5 + $0xb8] sm:$0xff] }
  0x2b   :  { %221 = vmatprep.subr.bf16.mxu0 %v220_v8  ;;  %v226_v19 = vpack.c.bf16 %v47_v16, %v46_v15  ;;  %v228_v20 = vpack.c.bf16 %v65_v18, %v64_v17  ;;  %v48_v21 = vld [vmem:[#allocation5 + $0x30] sm:$0xff]  ;;  %v49_v22 = vld [vmem:[#allocation5 + $0x38] sm:$0xff]  ;;  %v66_v23 = vld [vmem:[#allocation5 + $0xc0] sm:$0xff]  ;;  %p304_p5 = por %p303_p4, %p302_p3 }
  0x2c   :  { %v67_v24 = vld [vmem:[#allocation5 + $0xc8] sm:$0xff]  ;;  %v180_v25 = vld.sshfl [vmem:[#allocation2] sm:$0x33 pattern:$0x76325410]  ;;  %v230_v27 = vpack.c.bf16 %v49_v22, %v48_v21  ;;  %v50_v29 = vld [vmem:[#allocation5 + $0x40] sm:$0xff] }
  0x2d   :  { %v89_v26 = vcombine.high %v180_v25, %v180_v25  ;;  %v232_v28 = vpack.c.bf16 %v67_v24, %v66_v23  ;;  %v51_v30 = vld [vmem:[#allocation5 + $0x48] sm:$0xff]  ;;  %v68_v31 = vld [vmem:[#allocation5 + $0xd0] sm:$0xff]  ;;  %v69_v32 = vld [vmem:[#allocation5 + $0xd8] sm:$0xff]  ;;  %p305_p6 = pnand %p304_p5, %p298_p2 }
  0x2e   :  { %223 = vmatpush3.bf16.msra.mxu0 %v222_v13  ;;  %v234_v33 = vpack.c.bf16 %v51_v30, %v50_v29  ;;  %v236_v34 = vpack.c.bf16 %v69_v32, %v68_v31  ;;  %v52_v35 = vld [vmem:[#allocation5 + $0x50] sm:$0xff]  ;;  %v53_v36 = vld [vmem:[#allocation5 + $0x58] sm:$0xff]  ;;  %v70_v37 = vld [vmem:[#allocation5 + $0xe0] sm:$0xff] }
  0x2f   :  { %225 = vmatprep.subr.bf16.mxu0 %v224_v14  ;;  %156 = vmatprep.mubr.f32.mxu0 %v89_v26  ;;  %v71_v38 = vld [vmem:[#allocation5 + $0xe8] sm:$0xff]  ;;  %v238_v39 = vpack.c.bf16 %v53_v36, %v52_v35  ;;  %v54_v41 = vld [vmem:[#allocation5 + $0x60] sm:$0xff]  ;;  %v72_v43 = vld [vmem:[#allocation5 + $0xf0] sm:$0xff] }
  0x30   :  { %v240_v40 = vpack.c.bf16 %v71_v38, %v70_v37  ;;  %v55_v42 = vld [vmem:[#allocation5 + $0x68] sm:$0xff]  ;;  %v73_v44 = vld [vmem:[#allocation5 + $0xf8] sm:$0xff]  ;;  %v56_v47 = vld [vmem:[#allocation5 + $0x70] sm:$0xff] }
  0x31   :  { %v242_v45 = vpack.c.bf16 %v55_v42, %v54_v41  ;;  %v244_v46 = vpack.c.bf16 %v73_v44, %v72_v43  ;;  %v57_v48 = vld [vmem:[#allocation5 + $0x78] sm:$0xff] }
  0x32   :  { %227 = vmatpush3.bf16.msra.mxu0 %v226_v19  ;;  %v246_v49 = vpack.c.bf16 %v57_v48, %v56_v47  ;;  %v179_v51 = vld [vmem:[%s398_s2] ss:$0 sm:$0xff] }
  0x33   :  { %229 = vmatprep.subr.bf16.mxu0 %v228_v20 }
  0x36   :  { %231 = vmatpush3.bf16.msra.mxu0 %v230_v27 }
  0x37   :  { %233 = vmatprep.subr.bf16.mxu0 %v232_v28 }
  0x3a   :  { %235 = vmatpush3.bf16.msra.mxu0 %v234_v33 }
  0x3b   :  { %237 = vmatprep.subr.bf16.mxu0 %v236_v34 }
  0x3e   :  { %239 = vmatpush3.bf16.msra.mxu0 %v238_v39 }
  0x3f   :  { %241 = vmatprep.subr.bf16.mxu0 %v240_v40 }
  0x42   :  { %243 = vmatpush3.bf16.msra.mxu0 %v242_v45 }
  0x43   :  { %245 = vmatprep.subr.bf16.mxu0 %v244_v46 }
  0x46   :  { %247 = vmatpush3.bf16.msra.mxu0 %v246_v49 }
  0x49   :  { %157 = vmatmul.mubr.f32.vlgmr.msra.gmra.mrb[0].mxu0 %v180_v25 }
 0x11c   :  { %v213_v50 = vpop.f32.mrb[0].mxu0 }
 0x11d   :  { %v214_v52 = vpop.f32.mrb[1].mxu0 }
 0x11e   :  { %v215_v53 = vadd.f32 %v214_v52, %v213_v50 }
 0x120   :  { %v159_v54 = vadd.f32 %v215_v53, %v179_v51 }
 0x122   :  { %162 = vst [vmem:[#allocation7] sm:$0x3] %v159_v54 }
 0x123   :  { %308 = shalt.err (!%p305_p6)
}
 0x124   :  { %s309_s16 = scalar_lea.hbm %s399_s3, 32 }
 0x125   :  { %p310_p7 = scmp.ne.s32.totalorder %s399_s3, %s309_s16  ;;  %p313_p8 = scmp.lt.u32.totalorder %s309_s16, %s399_s3 }
 0x127   :  { %p315_p9 = pnand %p313_p8, %p310_p7 }
 0x129   :  { %318 = shalt.err (!%p315_p9)
}
 0x12a   :  { %172 = dma.vmem_to_hbm [thread:$0]  %s170_s12, 32, %s399_s3, [#allocation4]  }
 0x12b   :  { %323 = dma.done.wait [#allocation4], 32  }
 0x12c   :  { %324 = vsyncadd [#allocation4], 4294967264 }
 0x12d   :  { %176 = vsyncpa [#allocation3], 1 }
 0x12e   :  { %177 = vsyncpa [#allocation6], 1 }
 0x12f   :  { %178 = vsyncpa [#allocation4], 1 }

</bundles_post_ra>
